<compile_context>
chip_gen: v5e
topology: v5e:2x2
jax: 0.10.0
libtpu: 0.0.40
codegen_flags: <defaults>
</compile_context>

<pallas_src>
import math

import jax
import jax.numpy as jnp
from jax.experimental import pallas as pl
from jax.experimental.pallas import tpu as pltpu

_LANE = 128
_SUBLANE = 8


def _frft_scale_kernel(s_ref, x_ref, or_ref, oi_ref):
    """out_{r,i} = x * S_{r,i}; S packed as row 0 = real, row 1 = imag."""
    s = s_ref[...]                              # (2, lt) f32 scale block
    x = x_ref[...].astype(jnp.float32)          # (bt, lt); in-register cast (VPU has slack)
    or_ref[...] = (x * s[0:1, :]).astype(or_ref.dtype)
    oi_ref[...] = (x * s[1:2, :]).astype(oi_ref.dtype)


def _frft_diag(n, order):
    """Diagonal of F = sqrt(n) * diag(exp(-i*pi/2*order*l))  (Evec == eye(n) case)."""
    even = 1 - n % 2
    l = jnp.array(list(range(0, n - 1)) + [n - 1 + even], dtype=jnp.float32)
    theta = (-math.pi / 2.0) * jnp.reshape(order, ()) * l
    scale = float(n) ** 0.5
    return scale * jnp.cos(theta), scale * jnp.sin(theta)


def _pick_tiles(B, hw_pad):
    """Byte-driven tile selection: lane-dense blocks, VMEM-budgeted batch tile."""
    if hw_pad <= 2048:
        lt = hw_pad                                # single lane block
    else:
        m = hw_pad // _LANE
        g = next(c for c in range(16, 0, -1) if m % c == 0)
        lt = _LANE * g                             # <= 2048 lanes, divides hw_pad
    # 1 input + 2 output (bt, lt) f32 blocks, double-buffered, must fit the budget.
    budget = 24 << 20                              # conservative; fits v7x 64 MiB VMEM/TC
    bt_cap = max(_SUBLANE, (budget // (3 * 2 * lt * 4)) // _SUBLANE * _SUBLANE)
    bt = B if B <= bt_cap else bt_cap
    return bt, lt


def frft2d_planes(x, order, *, use_pallas=None):
    """FRFT2D returning split (real, imag) float32 planes of shape (N, C, H, W).

    Downstream consumers should use this directly to avoid a standalone complex64
    interleave pass; frft2d() below interleaves once for PyTorch-API parity.
    """
    # TODO(synk): assumes real-valued x (the PyTorch forward casts a real tensor to
    # complex64); complex input would need the full 4-term complex product.
    N, C, H, W = x.shape
    B, HW = N * C, H * W

    dh_r, dh_i = _frft_diag(H, order)
    dw_r, dw_i = _frft_diag(W, order)

    # Per-axis fftshift fold: for an even axis P^2 = I, so both shifts collapse into
    # fftshift() of that axis' diagonal.  Odd axes fall back to explicit shifts.
    odd_axes = []
    if H % 2 == 0:
        dh_r, dh_i = jnp.fft.fftshift(dh_r), jnp.fft.fftshift(dh_i)
    else:
        odd_axes.append(2)
    if W % 2 == 0:
        dw_r, dw_i = jnp.fft.fftshift(dw_r), jnp.fft.fftshift(dw_i)
    else:
        odd_axes.append(3)

    # Separable complex scale plane S = dH ⊗ dW (tiny (H, W) precompute).
    sr = jnp.outer(dh_r, dw_r) - jnp.outer(dh_i, dw_i)
    si = jnp.outer(dh_r, dw_i) + jnp.outer(dh_i, dw_r)

    x_in = jnp.fft.fftshift(x, axes=odd_axes) if odd_axes else x

    if use_pallas is None:
        # Below ~1 MiB the Mosaic launch/grid overhead dominates: let XLA fuse.
        use_pallas = x.size * x.dtype.itemsize >= (1 << 20)

    if not use_pallas:
        xf = x_in.astype(jnp.float32)
        out_r = xf * sr[None, None]
        out_i = xf * si[None, None]
    else:
        hw_pad = pl.cdiv(HW, _LANE) * _LANE
        bt, lt = _pick_tiles(B, hw_pad)
        b_pad = pl.cdiv(B, bt) * bt

        x2d = x_in.reshape(B, HW)                                  # native dtype; cast in-kernel
        s_packed = jnp.stack([sr.reshape(-1), si.reshape(-1)], axis=0).astype(jnp.float32)
        if hw_pad != HW:
            x2d = jnp.pad(x2d, ((0, 0), (0, hw_pad - HW)))
            s_packed = jnp.pad(s_packed, ((0, 0), (0, hw_pad - HW)))
        if b_pad != B:
            x2d = jnp.pad(x2d, ((0, b_pad - B), (0, 0)))

        grid = (b_pad // bt, hw_pad // lt)
        # scale (dbl-buffered) + (1 in + 2 out) blocks (dbl-buffered) + headroom
        need = 2 * (2 * lt * 4) + 2 * 3 * (bt * lt * 4)
        vmem_limit = int(min(64 << 20, max(32 << 20, need + (8 << 20))))

        out_r, out_i = pl.pallas_call(
            _frft_scale_kernel,
            out_shape=(jax.ShapeDtypeStruct((b_pad, hw_pad), jnp.float32),
                       jax.ShapeDtypeStruct((b_pad, hw_pad), jnp.float32)),
            grid_spec=pltpu.PrefetchScalarGridSpec(
                num_scalar_prefetch=0,
                grid=grid,
                in_specs=[
                    pl.BlockSpec((2, lt), lambda b, j: (0, j)),    # packed Sr/Si plane
                    pl.BlockSpec((bt, lt), lambda b, j: (b, j)),   # x slab
                ],
                out_specs=[
                    pl.BlockSpec((bt, lt), lambda b, j: (b, j)),
                    pl.BlockSpec((bt, lt), lambda b, j: (b, j)),
                ],
            ),
            compiler_params=pltpu.CompilerParams(
                dimension_semantics=("parallel", "parallel"),
                vmem_limit_bytes=vmem_limit),
        )(s_packed, x2d)

        if b_pad != B:
            out_r, out_i = out_r[:B], out_i[:B]
        if hw_pad != HW:
            out_r, out_i = out_r[:, :HW], out_i[:, :HW]
        out_r = out_r.reshape(N, C, H, W)
        out_i = out_i.reshape(N, C, H, W)

    if odd_axes:
        out_r = jnp.fft.fftshift(out_r, axes=odd_axes)
        out_i = jnp.fft.fftshift(out_i, axes=odd_axes)
    return out_r, out_i


def frft2d(x, order, *, use_pallas=None):
    """Pallas-backed equivalent of FRFT.forward (== FRFT2D), complex64 output."""
    out_r, out_i = frft2d_planes(x, order, use_pallas=use_pallas)
    # Single interleave into complex64 for module-API parity; downstream consumers
    # that can take split planes should call frft2d_planes() and skip this pass.
    return jax.lax.complex(out_r, out_i)


def frft2d_ref(x, order):
    """Pure-JAX mirror of the PyTorch FRFT2D (full matrices, explicit shifts)."""
    N, C, H, W = x.shape

    def dfrtmtrx(n):
        even = 1 - n % 2
        l = jnp.array(list(range(0, n - 1)) + [n - 1 + even], dtype=jnp.float32)
        f = jnp.diag(jnp.exp(-1j * (math.pi / 2.0) * jnp.reshape(order, ()) * l))
        evec = jnp.eye(n, dtype=jnp.complex64)
        return (float(n) ** 0.5) * jnp.einsum('ij,jk,ni->nk', f, evec.T, evec)

    h_mat = dfrtmtrx(H).astype(jnp.complex64)
    w_mat = dfrtmtrx(W).astype(jnp.complex64)
    xs = jnp.fft.fftshift(x, axes=(2, 3)).astype(jnp.complex64)
    out = jnp.einsum('ij,ncjk,kl->ncil', h_mat, xs, w_mat)
    return jnp.fft.fftshift(out, axes=(2, 3))


if __name__ == "__main__":
    key = jax.random.PRNGKey(0)
    k_x, k_order = jax.random.split(key)

    # Forward only touches x and the scalar `order` parameter (in_channels=4 conceptually).
    x = jax.random.normal(k_x, (2, 4, 16, 16), dtype=jnp.float32)
    order = jax.random.normal(k_order, (1,), dtype=jnp.float32)  # nn.Parameter(torch.randn(1))

    # Force the Pallas path for the demo (auto-dispatch would route this 8 KiB
    # tensor to the fused-jnp small-size path).
    frft_pallas = jax.jit(lambda xx, oo: frft2d(xx, oo, use_pallas=True))
    out = jax.block_until_ready(frft_pallas(x, order))

    assert out.shape == (2, 4, 16, 16)
    assert out.dtype == jnp.complex64

    ref = frft2d_ref(x, order)
    assert jnp.allclose(out, ref, atol=1e-3, rtol=1e-3), "Pallas output mismatch vs reference"

    # The small-tensor fused path (what auto-dispatch picks at this size) must match too.
    out_small = jax.block_until_ready(jax.jit(frft2d)(x, order))
    assert jnp.allclose(out_small, ref, atol=1e-3, rtol=1e-3), "fused-path mismatch vs reference"

    print("KERNEL_OK")
</pallas_src>

<mosaic_0001>
module attributes {stable_mosaic.version = 11 : i64} {
  func.func @_frft_scale_kernel(%arg0: i32, %arg1: i32, %arg2: memref<2x256xf32, #tpu.memory_space<vmem>>, %arg3: memref<8x256xf32, #tpu.memory_space<vmem>>, %arg4: memref<8x256xf32, #tpu.memory_space<vmem>>, %arg5: memref<8x256xf32, #tpu.memory_space<vmem>>) attributes {dimension_semantics = [#tpu.dimension_semantics<parallel>, #tpu.dimension_semantics<parallel>], iteration_bounds = array<i64: 1, 1>, scalar_prefetch = 0 : i64, scratch_operands = 0 : i64, tpu.core_type = #tpu.core_type<tc>, window_params = [{transform_indices = @transform_0, window_bounds = array<i64: 2, 256>}, {transform_indices = @transform_1, window_bounds = array<i64: 8, 256>}, {transform_indices = @transform_2, window_bounds = array<i64: 8, 256>}, {transform_indices = @transform_3, window_bounds = array<i64: 8, 256>}]} {
    %c0 = arith.constant 0 : index
    %c0_0 = arith.constant 0 : index
    %0 = vector.load %arg2[%c0, %c0_0] : memref<2x256xf32, #tpu.memory_space<vmem>>, vector<2x256xf32>
    %c0_1 = arith.constant 0 : index
    %c0_2 = arith.constant 0 : index
    %1 = vector.load %arg3[%c0_1, %c0_2] : memref<8x256xf32, #tpu.memory_space<vmem>>, vector<8x256xf32>
    %2 = vector.extract_strided_slice %0 {offsets = [0, 0], sizes = [1, 256], strides = [1, 1]} : vector<2x256xf32> to vector<1x256xf32>
    %3 = vector.broadcast %2 : vector<1x256xf32> to vector<8x256xf32>
    %4 = arith.mulf %1, %3 : vector<8x256xf32>
    %c0_3 = arith.constant 0 : index
    %c0_4 = arith.constant 0 : index
    %5 = vector.load %arg4[%c0_3, %c0_4] : memref<8x256xf32, #tpu.memory_space<vmem>>, vector<8x256xf32>
    tpu.vector_store %arg4[%c0_3, %c0_4], %4 {strides = array<i32>} : memref<8x256xf32, #tpu.memory_space<vmem>>, vector<8x256xf32>,
    %6 = vector.extract_strided_slice %0 {offsets = [1, 0], sizes = [1, 256], strides = [1, 1]} : vector<2x256xf32> to vector<1x256xf32>
    %7 = vector.broadcast %6 : vector<1x256xf32> to vector<8x256xf32>
    %8 = arith.mulf %1, %7 : vector<8x256xf32>
    %c0_5 = arith.constant 0 : index
    %c0_6 = arith.constant 0 : index
    %9 = vector.load %arg5[%c0_5, %c0_6] : memref<8x256xf32, #tpu.memory_space<vmem>>, vector<8x256xf32>
    tpu.vector_store %arg5[%c0_5, %c0_6], %8 {strides = array<i32>} : memref<8x256xf32, #tpu.memory_space<vmem>>, vector<8x256xf32>,
    return
  }
  func.func @transform_0(%arg0: i32, %arg1: i32) -> (i32, i32) {
    %c0_i32 = arith.constant 0 : i32
    %c0_i32_0 = arith.constant 0 : i32
    return %c0_i32, %arg1 : i32, i32
  }
  func.func @transform_1(%arg0: i32, %arg1: i32) -> (i32, i32) {
    %c0_i32 = arith.constant 0 : i32
    return %arg0, %arg1 : i32, i32
  }
  func.func @transform_2(%arg0: i32, %arg1: i32) -> (i32, i32) {
    %c0_i32 = arith.constant 0 : i32
    return %arg0, %arg1 : i32, i32
  }
  func.func @transform_3(%arg0: i32, %arg1: i32) -> (i32, i32) {
    %c0_i32 = arith.constant 0 : i32
    return %arg0, %arg1 : i32, i32
  }
}

</mosaic_0001>

<bundles_post_ra>
// kernel: custom-call
= control target key start
LH: loop header
LB: loop body
LE: loop exit
PB: predicated region body
PF: predicated region fallthrough
CT: control target
= control target key end

     0   :  { %s105_s0 = inlined_call_operand.vmem [shape: f32[2,4,16,16], index: 0, kind: input, shape index: {}]   ;;  %s106_s1 = inlined_call_operand.vmem [shape: f32[2,4,16,16], index: 1, kind: input, shape index: {}]   ;;  %s107_s2 = inlined_call_operand.hbm [shape: c64[2,4,16,16], index: 2, kind: output, shape index: {}]  }
   0x1   :  { %s3_s11 = scalar_lea.hbm %s107_s2, 128 }
   0x2   :  { %4 = vsyncpa [#allocation0], 0  ;;  %s6_s14 = sshll.u32 %s105_s0, 4  ;;  %s8_s17 = sshll.u32 %s107_s2, 4  ;;  %s7_s14 = int_to_ptr.vmem [resolvable:$true] %s6_s14  ;;  %s9_s17 = int_to_ptr.hbm [resolvable:$true] %s8_s17 }
   0x3   :  { %11 = dma.vmem_to_hbm [thread:$0]  %s7_s14, 2048, %s9_s17, [#allocation0] }
   0x4   :  { %74 = dma.done.wait [#allocation0], 2048  }
   0x5   :  { %75 = vsyncadd [#allocation0], 4294965248 }
   0x6   :  { %14 = vsyncpa [#allocation0], 1 }
   0x7   :  { %15 = vsyncpa [#allocation1], 0  ;;  %s17_s20 = sshll.u32 %s106_s1, 4  ;;  %s19_s21 = sshll.u32 %s3_s11, 4  ;;  %s18_s20 = int_to_ptr.vmem [resolvable:$true] %s17_s20  ;;  %s20_s21 = int_to_ptr.hbm [resolvable:$true] %s19_s21 }
   0x8   :  { %22 = dma.vmem_to_hbm [thread:$0]  %s18_s20, 2048, %s20_s21, [#allocation1] }
   0x9   :  { %76 = dma.done.wait [#allocation1], 2048  }
   0xa   :  { %77 = vsyncadd [#allocation1], 4294965248 }
   0xb   :  { %25 = vsyncpa [#allocation1], 1 }

// kernel: _lambda_.1
= control target key start
LH: loop header
LB: loop body
LE: loop exit
PB: predicated region body
PF: predicated region fallthrough
CT: control target
= control target key end

     0   :  { %s86_s0 = inlined_call_operand.vmem [shape: f32[2,256], index: 0, kind: input, shape index: {}]   ;;  %s87_s1 = inlined_call_operand.vmem [shape: f32[8,256], index: 1, kind: input, shape index: {}]   ;;  %s88_s2 = inlined_call_operand.vmem [shape: f32[8,256], index: 2, kind: output, shape index: {0}]   ;;  %s89_s3 = inlined_call_operand.vmem [shape: f32[8,256], index: 3, kind: output, shape index: {1}]  }
   0x1   :  { %v13_v0 = vld [vmem:[%s86_s0] sm:$0xf]  ;;  %v15_v6 = vld [vmem:[%s87_s1 + $0x8] sm:$0xff] }
   0x2   :  { %v17_v1 = vperm.slane %v13_v0, 0  ;;  %v18_v2 = vperm.slane %v13_v0, 2  ;;  %v27_v3 = vperm.slane %v13_v0, 1  ;;  %v28_v4 = vperm.slane %v13_v0, 3  ;;  %v14_v5 = vld [vmem:[%s87_s1] sm:$0xff] }
   0x4   :  { %v21_v7 = vperm.slane %v17_v1, 0  ;;  %v22_v8 = vperm.slane %v18_v2, 0  ;;  %v31_v9 = vperm.slane %v27_v3, 1  ;;  %v32_v10 = vperm.slane %v28_v4, 1 }
   0x6   :  { %v23_v11 = vmul.f32 %v21_v7, %v14_v5  ;;  %v24_v12 = vmul.f32 %v22_v8, %v15_v6  ;;  %v33_v13 = vmul.f32 %v31_v9, %v14_v5  ;;  %v34_v14 = vmul.f32 %v32_v10, %v15_v6 }
   0x8   :  { %25 = vst [vmem:[%s88_s2] sm:$0xff] %v23_v11 }
   0x9   :  { %26 = vst [vmem:[%s88_s2 + $0x8] sm:$0xff] %v24_v12 }
   0xa   :  { %35 = vst [vmem:[%s89_s3] sm:$0xff] %v33_v13 }
   0xb   :  { %36 = vst [vmem:[%s89_s3 + $0x8] sm:$0xff] %v34_v14 }

</bundles_post_ra>
